<compile_context>
chip_gen: v5e
topology: v5e:2x2
jax: 0.10.0
libtpu: 0.0.40
codegen_flags: <defaults>
</compile_context>

<pallas_src>
import jax
import jax.numpy as jnp
from jax.experimental import pallas as pl
from jax.experimental.pallas import tpu as pltpu

_LANE = 128   # lane width of a vreg
_SUB = 16     # batch rows per inner step (2 f32 vregs or 1 bf16 vreg per value)


def _actor_kernel(s_ref, w1_ref, b1_ref, w2_ref, b2_ref, w3_ref, b3_ref, o_ref):
    # s_ref: (4, R, 128) VMEM  -- features on axis 0, batch on (sublanes, lanes)
    # w*/b*: flattened 1-D f32 parameter tables in SMEM, read as scalars
    # o_ref: (R, 128) f32 VMEM -- p0 only (lane-dense, unmasked stores)
    cdt = s_ref.dtype  # compute dtype follows the input (f32 or bf16)

    # ---- scalar prologue (hoisted above the batch loop) ----
    w1 = [[w1_ref[i * 8 + j].astype(cdt) for j in range(8)] for i in range(4)]
    b1 = [b1_ref[j].astype(cdt) for j in range(8)]
    w2 = [[w2_ref[i * 4 + j].astype(cdt) for j in range(4)] for i in range(8)]
    b2 = [b2_ref[j].astype(cdt) for j in range(4)]
    # Fold the 2-class head into one logit-difference column (kept in f32).
    w3d = [w3_ref[i * 2 + 0] - w3_ref[i * 2 + 1] for i in range(4)]
    b3d = b3_ref[0] - b3_ref[1]

    x_refs = [s_ref.at[i] for i in range(4)]   # static views, zero cost
    R = s_ref.shape[1]

    def body(t, carry):
        r = pl.multiple_of(t * _SUB, _SUB)
        x = [x_refs[i][pl.ds(r, _SUB), :] for i in range(4)]   # 4 x (_SUB, 128)

        # Linear(4, 8) + ReLU -- unrolled VPU broadcast-FMAs
        h1 = []
        for j in range(8):
            v = x[0] * w1[0][j]
            for i in range(1, 4):
                v = v + x[i] * w1[i][j]
            h1.append(jnp.maximum(v + b1[j], 0.0))

        # Linear(8, 4) + ReLU
        h2 = []
        for j in range(4):
            v = h1[0] * w2[0][j]
            for i in range(1, 8):
                v = v + h1[i] * w2[i][j]
            h2.append(jnp.maximum(v + b2[j], 0.0))

        # Folded head: softmax over 2 classes == sigmoid(logit0 - logit1).
        acc = h2[0].astype(jnp.float32) * w3d[0]
        for i in range(1, 4):
            acc = acc + h2[i].astype(jnp.float32) * w3d[i]
        o_ref[pl.ds(r, _SUB), :] = jax.nn.sigmoid(acc + b3d)
        return carry

    jax.lax.fori_loop(0, R // _SUB, body, 0)


def _default_compute_dtype():
    """bf16 on v6e/v7x (bf16 VALU/EUP); f32 on v5e and older/unknown."""
    try:
        kind = jax.devices()[0].device_kind.lower()
    except Exception:
        return jnp.float32
    if ("v6" in kind) or ("v7" in kind):
        return jnp.bfloat16
    return jnp.float32


def _reference_forward(s, params):
    """Pure-JAX reference (also used as the small-batch fused-XLA path)."""
    w1, b1, w2, b2, w3, b3 = params
    h1 = jnp.maximum(s @ w1 + b1, 0.0)
    h2 = jnp.maximum(h1 @ w2 + b2, 0.0)
    logits = h2 @ w3 + b3
    return jax.nn.softmax(logits, axis=-1)


def nn_actor_forward(s, params, *, tile_rows=1024, min_pallas_batch=4096,
                     compute_dtype=None):
    """s: [B, 4] float32 -> probs: [B, 2] float32 (matches NNActor.forward)."""
    w1, b1, w2, b2, w3, b3 = params
    B = s.shape[0]

    # PPO actor calls this with a handful of states: padding to 128 lanes and
    # the layout round-trip would dominate, so use the fused XLA path there.
    if B < min_pallas_batch:
        return _reference_forward(s.astype(jnp.float32), params)

    dt = compute_dtype if compute_dtype is not None else _default_compute_dtype()

    # Batch packed across sublanes AND lanes: rows of 128 batch elements.
    rows_needed = -(-B // _LANE)
    tr = min(tile_rows, -(-rows_needed // _SUB) * _SUB)
    tr = max(_SUB, -(-tr // _SUB) * _SUB)
    rows_padded = -(-rows_needed // tr) * tr
    padded_b = rows_padded * _LANE

    # TODO(synk): keep activations in (4, B) layout end-to-end in the PPO
    # pipeline to drop this XLA-level transpose/pad pass.
    s_t = jnp.pad(jnp.transpose(s).astype(dt), ((0, 0), (0, padded_b - B)))
    s3 = s_t.reshape(4, rows_padded, _LANE)   # free, contiguous reshape

    smem = pl.BlockSpec(memory_space=pltpu.MemorySpace.SMEM)
    p0 = pl.pallas_call(
        _actor_kernel,
        out_shape=jax.ShapeDtypeStruct((rows_padded, _LANE), jnp.float32),
        grid=(rows_padded // tr,),
        in_specs=[
            pl.BlockSpec((4, tr, _LANE), lambda i: (0, i, 0)),  # activations
            smem, smem, smem, smem, smem, smem,                 # tiny params
        ],
        out_specs=pl.BlockSpec((tr, _LANE), lambda i: (i, 0)),
        compiler_params=pltpu.CompilerParams(
            dimension_semantics=("parallel",)),   # pipelined; megacore on v7x
    )(s3,
      w1.reshape(-1).astype(jnp.float32), b1.astype(jnp.float32),
      w2.reshape(-1).astype(jnp.float32), b2.astype(jnp.float32),
      w3.reshape(-1).astype(jnp.float32), b3.astype(jnp.float32))

    p0 = p0.reshape(padded_b)[:B]
    return jnp.stack((p0, 1.0 - p0), axis=-1)   # [B, 2]


def init_params(key):
    """PyTorch nn.Linear-style init (U[-1/sqrt(fan_in), 1/sqrt(fan_in)]).
    NOTE: weights stored [in, out] (transposed vs. torch nn.Linear.weight's
    [out, in]); transpose when loading a real PyTorch checkpoint."""
    def linear(key, fan_in, fan_out):
        kw, kb = jax.random.split(key)
        bound = 1.0 / jnp.sqrt(fan_in)
        w = jax.random.uniform(kw, (fan_in, fan_out), jnp.float32, -bound, bound)
        b = jax.random.uniform(kb, (fan_out,), jnp.float32, -bound, bound)
        return w, b

    k1, k2, k3 = jax.random.split(key, 3)
    w1, b1 = linear(k1, 4, 8)
    w2, b2 = linear(k2, 8, 4)
    w3, b3 = linear(k3, 4, 2)
    return (w1, b1, w2, b2, w3, b3)


if __name__ == "__main__":
    key = jax.random.PRNGKey(0)
    k_params, k1, k2, k3 = jax.random.split(key, 4)
    params = init_params(k_params)

    # 1) Kernel path, f32 compute, batch not a multiple of 128 (padding path).
    s_a = jax.random.normal(k1, (300, 4), jnp.float32)
    p_a = jax.block_until_ready(
        nn_actor_forward(s_a, params, min_pallas_batch=0,
                         compute_dtype=jnp.float32))
    ref_a = _reference_forward(s_a, params)
    assert p_a.shape == (300, 2)
    assert jnp.allclose(p_a, ref_a, atol=1e-5, rtol=1e-5)
    assert jnp.allclose(jnp.sum(p_a, axis=-1), 1.0, atol=1e-6)

    # 2) Multi-tile grid + generation-appropriate compute dtype
    #    (bf16 on v6e/v7x, f32 on v5e and older).
    auto_dt = _default_compute_dtype()
    tol = 1e-5 if auto_dt == jnp.float32 else 3e-2
    s_b = jax.random.normal(k2, (20_000, 4), jnp.float32)
    p_b = jax.block_until_ready(
        nn_actor_forward(s_b, params, min_pallas_batch=0,
                         tile_rows=64, compute_dtype=auto_dt))
    ref_b = _reference_forward(s_b, params)
    assert p_b.shape == (20_000, 2)
    assert jnp.allclose(p_b, ref_b, atol=tol, rtol=tol)
    assert jnp.allclose(jnp.sum(p_b, axis=-1), 1.0, atol=1e-5)

    # 3) PPO-sized batch -> fused-XLA fallback path.
    s_c = jax.random.normal(k3, (8, 4), jnp.float32)
    p_c = jax.block_until_ready(nn_actor_forward(s_c, params))
    ref_c = _reference_forward(s_c, params)
    assert p_c.shape == (8, 2)
    assert jnp.allclose(p_c, ref_c, atol=1e-6)

    print("KERNEL_OK")
</pallas_src>

<mosaic_0001>
module attributes {stable_mosaic.version = 11 : i64} {
  func.func @_actor_kernel(%arg0: i32, %arg1: memref<4x16x128xf32, #tpu.memory_space<vmem>>, %arg2: memref<32xf32, #tpu.memory_space<smem>>, %arg3: memref<8xf32, #tpu.memory_space<smem>>, %arg4: memref<32xf32, #tpu.memory_space<smem>>, %arg5: memref<4xf32, #tpu.memory_space<smem>>, %arg6: memref<8xf32, #tpu.memory_space<smem>>, %arg7: memref<2xf32, #tpu.memory_space<smem>>, %arg8: memref<16x128xf32, #tpu.memory_space<vmem>>) attributes {dimension_semantics = [#tpu.dimension_semantics<parallel>], iteration_bounds = array<i64: 1>, scalar_prefetch = 0 : i64, scratch_operands = 0 : i64, tpu.core_type = #tpu.core_type<tc>, window_params = [{transform_indices = @transform_0, window_bounds = array<i64: 4, 16, 128>}, {transform_indices = @transform_1, window_bounds = array<i64: 32>}, {transform_indices = @transform_2, window_bounds = array<i64: 8>}, {transform_indices = @transform_3, window_bounds = array<i64: 32>}, {transform_indices = @transform_4, window_bounds = array<i64: 4>}, {transform_indices = @transform_5, window_bounds = array<i64: 8>}, {transform_indices = @transform_6, window_bounds = array<i64: 2>}, {transform_indices = @transform_7, window_bounds = array<i64: 16, 128>}]} {
    %c0 = arith.constant 0 : index
    %0 = memref.load %arg2[%c0] : memref<32xf32, #tpu.memory_space<smem>>
    %c1 = arith.constant 1 : index
    %1 = memref.load %arg2[%c1] : memref<32xf32, #tpu.memory_space<smem>>
    %c2 = arith.constant 2 : index
    %2 = memref.load %arg2[%c2] : memref<32xf32, #tpu.memory_space<smem>>
    %c3 = arith.constant 3 : index
    %3 = memref.load %arg2[%c3] : memref<32xf32, #tpu.memory_space<smem>>
    %c4 = arith.constant 4 : index
    %4 = memref.load %arg2[%c4] : memref<32xf32, #tpu.memory_space<smem>>
    %c5 = arith.constant 5 : index
    %5 = memref.load %arg2[%c5] : memref<32xf32, #tpu.memory_space<smem>>
    %c6 = arith.constant 6 : index
    %6 = memref.load %arg2[%c6] : memref<32xf32, #tpu.memory_space<smem>>
    %c7 = arith.constant 7 : index
    %7 = memref.load %arg2[%c7] : memref<32xf32, #tpu.memory_space<smem>>
    %c8 = arith.constant 8 : index
    %8 = memref.load %arg2[%c8] : memref<32xf32, #tpu.memory_space<smem>>
    %c9 = arith.constant 9 : index
    %9 = memref.load %arg2[%c9] : memref<32xf32, #tpu.memory_space<smem>>
    %c10 = arith.constant 10 : index
    %10 = memref.load %arg2[%c10] : memref<32xf32, #tpu.memory_space<smem>>
    %c11 = arith.constant 11 : index
    %11 = memref.load %arg2[%c11] : memref<32xf32, #tpu.memory_space<smem>>
    %c12 = arith.constant 12 : index
    %12 = memref.load %arg2[%c12] : memref<32xf32, #tpu.memory_space<smem>>
    %c13 = arith.constant 13 : index
    %13 = memref.load %arg2[%c13] : memref<32xf32, #tpu.memory_space<smem>>
    %c14 = arith.constant 14 : index
    %14 = memref.load %arg2[%c14] : memref<32xf32, #tpu.memory_space<smem>>
    %c15 = arith.constant 15 : index
    %15 = memref.load %arg2[%c15] : memref<32xf32, #tpu.memory_space<smem>>
    %c16 = arith.constant 16 : index
    %16 = memref.load %arg2[%c16] : memref<32xf32, #tpu.memory_space<smem>>
    %c17 = arith.constant 17 : index
    %17 = memref.load %arg2[%c17] : memref<32xf32, #tpu.memory_space<smem>>
    %c18 = arith.constant 18 : index
    %18 = memref.load %arg2[%c18] : memref<32xf32, #tpu.memory_space<smem>>
    %c19 = arith.constant 19 : index
    %19 = memref.load %arg2[%c19] : memref<32xf32, #tpu.memory_space<smem>>
    %c20 = arith.constant 20 : index
    %20 = memref.load %arg2[%c20] : memref<32xf32, #tpu.memory_space<smem>>
    %c21 = arith.constant 21 : index
    %21 = memref.load %arg2[%c21] : memref<32xf32, #tpu.memory_space<smem>>
    %c22 = arith.constant 22 : index
    %22 = memref.load %arg2[%c22] : memref<32xf32, #tpu.memory_space<smem>>
    %c23 = arith.constant 23 : index
    %23 = memref.load %arg2[%c23] : memref<32xf32, #tpu.memory_space<smem>>
    %c24 = arith.constant 24 : index
    %24 = memref.load %arg2[%c24] : memref<32xf32, #tpu.memory_space<smem>>
    %c25 = arith.constant 25 : index
    %25 = memref.load %arg2[%c25] : memref<32xf32, #tpu.memory_space<smem>>
    %c26 = arith.constant 26 : index
    %26 = memref.load %arg2[%c26] : memref<32xf32, #tpu.memory_space<smem>>
    %c27 = arith.constant 27 : index
    %27 = memref.load %arg2[%c27] : memref<32xf32, #tpu.memory_space<smem>>
    %c28 = arith.constant 28 : index
    %28 = memref.load %arg2[%c28] : memref<32xf32, #tpu.memory_space<smem>>
    %c29 = arith.constant 29 : index
    %29 = memref.load %arg2[%c29] : memref<32xf32, #tpu.memory_space<smem>>
    %c30 = arith.constant 30 : index
    %30 = memref.load %arg2[%c30] : memref<32xf32, #tpu.memory_space<smem>>
    %c31 = arith.constant 31 : index
    %31 = memref.load %arg2[%c31] : memref<32xf32, #tpu.memory_space<smem>>
    %c0_0 = arith.constant 0 : index
    %32 = memref.load %arg3[%c0_0] : memref<8xf32, #tpu.memory_space<smem>>
    %c1_1 = arith.constant 1 : index
    %33 = memref.load %arg3[%c1_1] : memref<8xf32, #tpu.memory_space<smem>>
    %c2_2 = arith.constant 2 : index
    %34 = memref.load %arg3[%c2_2] : memref<8xf32, #tpu.memory_space<smem>>
    %c3_3 = arith.constant 3 : index
    %35 = memref.load %arg3[%c3_3] : memref<8xf32, #tpu.memory_space<smem>>
    %c4_4 = arith.constant 4 : index
    %36 = memref.load %arg3[%c4_4] : memref<8xf32, #tpu.memory_space<smem>>
    %c5_5 = arith.constant 5 : index
    %37 = memref.load %arg3[%c5_5] : memref<8xf32, #tpu.memory_space<smem>>
    %c6_6 = arith.constant 6 : index
    %38 = memref.load %arg3[%c6_6] : memref<8xf32, #tpu.memory_space<smem>>
    %c7_7 = arith.constant 7 : index
    %39 = memref.load %arg3[%c7_7] : memref<8xf32, #tpu.memory_space<smem>>
    %c0_8 = arith.constant 0 : index
    %40 = memref.load %arg4[%c0_8] : memref<32xf32, #tpu.memory_space<smem>>
    %c1_9 = arith.constant 1 : index
    %41 = memref.load %arg4[%c1_9] : memref<32xf32, #tpu.memory_space<smem>>
    %c2_10 = arith.constant 2 : index
    %42 = memref.load %arg4[%c2_10] : memref<32xf32, #tpu.memory_space<smem>>
    %c3_11 = arith.constant 3 : index
    %43 = memref.load %arg4[%c3_11] : memref<32xf32, #tpu.memory_space<smem>>
    %c4_12 = arith.constant 4 : index
    %44 = memref.load %arg4[%c4_12] : memref<32xf32, #tpu.memory_space<smem>>
    %c5_13 = arith.constant 5 : index
    %45 = memref.load %arg4[%c5_13] : memref<32xf32, #tpu.memory_space<smem>>
    %c6_14 = arith.constant 6 : index
    %46 = memref.load %arg4[%c6_14] : memref<32xf32, #tpu.memory_space<smem>>
    %c7_15 = arith.constant 7 : index
    %47 = memref.load %arg4[%c7_15] : memref<32xf32, #tpu.memory_space<smem>>
    %c8_16 = arith.constant 8 : index
    %48 = memref.load %arg4[%c8_16] : memref<32xf32, #tpu.memory_space<smem>>
    %c9_17 = arith.constant 9 : index
    %49 = memref.load %arg4[%c9_17] : memref<32xf32, #tpu.memory_space<smem>>
    %c10_18 = arith.constant 10 : index
    %50 = memref.load %arg4[%c10_18] : memref<32xf32, #tpu.memory_space<smem>>
    %c11_19 = arith.constant 11 : index
    %51 = memref.load %arg4[%c11_19] : memref<32xf32, #tpu.memory_space<smem>>
    %c12_20 = arith.constant 12 : index
    %52 = memref.load %arg4[%c12_20] : memref<32xf32, #tpu.memory_space<smem>>
    %c13_21 = arith.constant 13 : index
    %53 = memref.load %arg4[%c13_21] : memref<32xf32, #tpu.memory_space<smem>>
    %c14_22 = arith.constant 14 : index
    %54 = memref.load %arg4[%c14_22] : memref<32xf32, #tpu.memory_space<smem>>
    %c15_23 = arith.constant 15 : index
    %55 = memref.load %arg4[%c15_23] : memref<32xf32, #tpu.memory_space<smem>>
    %c16_24 = arith.constant 16 : index
    %56 = memref.load %arg4[%c16_24] : memref<32xf32, #tpu.memory_space<smem>>
    %c17_25 = arith.constant 17 : index
    %57 = memref.load %arg4[%c17_25] : memref<32xf32, #tpu.memory_space<smem>>
    %c18_26 = arith.constant 18 : index
    %58 = memref.load %arg4[%c18_26] : memref<32xf32, #tpu.memory_space<smem>>
    %c19_27 = arith.constant 19 : index
    %59 = memref.load %arg4[%c19_27] : memref<32xf32, #tpu.memory_space<smem>>
    %c20_28 = arith.constant 20 : index
    %60 = memref.load %arg4[%c20_28] : memref<32xf32, #tpu.memory_space<smem>>
    %c21_29 = arith.constant 21 : index
    %61 = memref.load %arg4[%c21_29] : memref<32xf32, #tpu.memory_space<smem>>
    %c22_30 = arith.constant 22 : index
    %62 = memref.load %arg4[%c22_30] : memref<32xf32, #tpu.memory_space<smem>>
    %c23_31 = arith.constant 23 : index
    %63 = memref.load %arg4[%c23_31] : memref<32xf32, #tpu.memory_space<smem>>
    %c24_32 = arith.constant 24 : index
    %64 = memref.load %arg4[%c24_32] : memref<32xf32, #tpu.memory_space<smem>>
    %c25_33 = arith.constant 25 : index
    %65 = memref.load %arg4[%c25_33] : memref<32xf32, #tpu.memory_space<smem>>
    %c26_34 = arith.constant 26 : index
    %66 = memref.load %arg4[%c26_34] : memref<32xf32, #tpu.memory_space<smem>>
    %c27_35 = arith.constant 27 : index
    %67 = memref.load %arg4[%c27_35] : memref<32xf32, #tpu.memory_space<smem>>
    %c28_36 = arith.constant 28 : index
    %68 = memref.load %arg4[%c28_36] : memref<32xf32, #tpu.memory_space<smem>>
    %c29_37 = arith.constant 29 : index
    %69 = memref.load %arg4[%c29_37] : memref<32xf32, #tpu.memory_space<smem>>
    %c30_38 = arith.constant 30 : index
    %70 = memref.load %arg4[%c30_38] : memref<32xf32, #tpu.memory_space<smem>>
    %c31_39 = arith.constant 31 : index
    %71 = memref.load %arg4[%c31_39] : memref<32xf32, #tpu.memory_space<smem>>
    %c0_40 = arith.constant 0 : index
    %72 = memref.load %arg5[%c0_40] : memref<4xf32, #tpu.memory_space<smem>>
    %c1_41 = arith.constant 1 : index
    %73 = memref.load %arg5[%c1_41] : memref<4xf32, #tpu.memory_space<smem>>
    %c2_42 = arith.constant 2 : index
    %74 = memref.load %arg5[%c2_42] : memref<4xf32, #tpu.memory_space<smem>>
    %c3_43 = arith.constant 3 : index
    %75 = memref.load %arg5[%c3_43] : memref<4xf32, #tpu.memory_space<smem>>
    %c0_44 = arith.constant 0 : index
    %76 = memref.load %arg6[%c0_44] : memref<8xf32, #tpu.memory_space<smem>>
    %c1_45 = arith.constant 1 : index
    %77 = memref.load %arg6[%c1_45] : memref<8xf32, #tpu.memory_space<smem>>
    %78 = arith.subf %76, %77 : f32
    %c2_46 = arith.constant 2 : index
    %79 = memref.load %arg6[%c2_46] : memref<8xf32, #tpu.memory_space<smem>>
    %c3_47 = arith.constant 3 : index
    %80 = memref.load %arg6[%c3_47] : memref<8xf32, #tpu.memory_space<smem>>
    %81 = arith.subf %79, %80 : f32
    %c4_48 = arith.constant 4 : index
    %82 = memref.load %arg6[%c4_48] : memref<8xf32, #tpu.memory_space<smem>>
    %c5_49 = arith.constant 5 : index
    %83 = memref.load %arg6[%c5_49] : memref<8xf32, #tpu.memory_space<smem>>
    %84 = arith.subf %82, %83 : f32
    %c6_50 = arith.constant 6 : index
    %85 = memref.load %arg6[%c6_50] : memref<8xf32, #tpu.memory_space<smem>>
    %c7_51 = arith.constant 7 : index
    %86 = memref.load %arg6[%c7_51] : memref<8xf32, #tpu.memory_space<smem>>
    %87 = arith.subf %85, %86 : f32
    %c0_52 = arith.constant 0 : index
    %88 = memref.load %arg7[%c0_52] : memref<2xf32, #tpu.memory_space<smem>>
    %c1_53 = arith.constant 1 : index
    %89 = memref.load %arg7[%c1_53] : memref<2xf32, #tpu.memory_space<smem>>
    %90 = arith.subf %88, %89 : f32
    %c0_i32 = arith.constant 0 : i32
    %c1_i32 = arith.constant 1 : i32
    %c2_i32 = arith.constant 2 : i32
    %c3_i32 = arith.constant 3 : i32
    %c0_i32_54 = arith.constant 0 : i32
    %c16_i32 = arith.constant 16 : i32
    %91 = arith.muli %c0_i32_54, %c16_i32 : i32
    %92 = tpu.assume_multiple %91, 16 : i32
    %c0_i32_55 = arith.constant 0 : i32
    %c0_i32_56 = arith.constant 0 : i32
    %93 = tpu.memref_slice %arg1[%c0_i32, %c0_i32_55, %c0_i32_56] : memref<4x16x128xf32, #tpu.memory_space<vmem>> -> memref<1x16x128xf32, #tpu.memory_space<vmem>>
    %94 = tpu.memref_squeeze %93 : memref<1x16x128xf32, #tpu.memory_space<vmem>> -> memref<16x128xf32, #tpu.memory_space<vmem>>
    %95 = arith.index_cast %92 : i32 to index
    %c0_57 = arith.constant 0 : index
    %96 = vector.load %94[%95, %c0_57] : memref<16x128xf32, #tpu.memory_space<vmem>>, vector<16x128xf32>
    %c0_i32_58 = arith.constant 0 : i32
    %c0_i32_59 = arith.constant 0 : i32
    %97 = tpu.memref_slice %arg1[%c1_i32, %c0_i32_58, %c0_i32_59] : memref<4x16x128xf32, #tpu.memory_space<vmem>> -> memref<1x16x128xf32, #tpu.memory_space<vmem>>
    %98 = tpu.memref_squeeze %97 : memref<1x16x128xf32, #tpu.memory_space<vmem>> -> memref<16x128xf32, #tpu.memory_space<vmem>>
    %99 = arith.index_cast %92 : i32 to index
    %c0_60 = arith.constant 0 : index
    %100 = vector.load %98[%99, %c0_60] : memref<16x128xf32, #tpu.memory_space<vmem>>, vector<16x128xf32>
    %c0_i32_61 = arith.constant 0 : i32
    %c0_i32_62 = arith.constant 0 : i32
    %101 = tpu.memref_slice %arg1[%c2_i32, %c0_i32_61, %c0_i32_62] : memref<4x16x128xf32, #tpu.memory_space<vmem>> -> memref<1x16x128xf32, #tpu.memory_space<vmem>>
    %102 = tpu.memref_squeeze %101 : memref<1x16x128xf32, #tpu.memory_space<vmem>> -> memref<16x128xf32, #tpu.memory_space<vmem>>
    %103 = arith.index_cast %92 : i32 to index
    %c0_63 = arith.constant 0 : index
    %104 = vector.load %102[%103, %c0_63] : memref<16x128xf32, #tpu.memory_space<vmem>>, vector<16x128xf32>
    %c0_i32_64 = arith.constant 0 : i32
    %c0_i32_65 = arith.constant 0 : i32
    %105 = tpu.memref_slice %arg1[%c3_i32, %c0_i32_64, %c0_i32_65] : memref<4x16x128xf32, #tpu.memory_space<vmem>> -> memref<1x16x128xf32, #tpu.memory_space<vmem>>
    %106 = tpu.memref_squeeze %105 : memref<1x16x128xf32, #tpu.memory_space<vmem>> -> memref<16x128xf32, #tpu.memory_space<vmem>>
    %107 = arith.index_cast %92 : i32 to index
    %c0_66 = arith.constant 0 : index
    %108 = vector.load %106[%107, %c0_66] : memref<16x128xf32, #tpu.memory_space<vmem>>, vector<16x128xf32>
    %109 = vector.broadcast %0 : f32 to vector<16x128xf32>
    %110 = arith.mulf %96, %109 : vector<16x128xf32>
    %111 = vector.broadcast %8 : f32 to vector<16x128xf32>
    %112 = arith.mulf %100, %111 : vector<16x128xf32>
    %113 = arith.addf %110, %112 : vector<16x128xf32>
    %114 = vector.broadcast %16 : f32 to vector<16x128xf32>
    %115 = arith.mulf %104, %114 : vector<16x128xf32>
    %116 = arith.addf %113, %115 : vector<16x128xf32>
    %117 = vector.broadcast %24 : f32 to vector<16x128xf32>
    %118 = arith.mulf %108, %117 : vector<16x128xf32>
    %119 = arith.addf %116, %118 : vector<16x128xf32>
    %120 = vector.broadcast %32 : f32 to vector<16x128xf32>
    %121 = arith.addf %119, %120 : vector<16x128xf32>
    %cst = arith.constant 0.000000e+00 : f32
    %122 = vector.broadcast %cst : f32 to vector<16x128xf32>
    %123 = arith.maximumf %121, %122 : vector<16x128xf32>
    %124 = vector.broadcast %1 : f32 to vector<16x128xf32>
    %125 = arith.mulf %96, %124 : vector<16x128xf32>
    %126 = vector.broadcast %9 : f32 to vector<16x128xf32>
    %127 = arith.mulf %100, %126 : vector<16x128xf32>
    %128 = arith.addf %125, %127 : vector<16x128xf32>
    %129 = vector.broadcast %17 : f32 to vector<16x128xf32>
    %130 = arith.mulf %104, %129 : vector<16x128xf32>
    %131 = arith.addf %128, %130 : vector<16x128xf32>
    %132 = vector.broadcast %25 : f32 to vector<16x128xf32>
    %133 = arith.mulf %108, %132 : vector<16x128xf32>
    %134 = arith.addf %131, %133 : vector<16x128xf32>
    %135 = vector.broadcast %33 : f32 to vector<16x128xf32>
    %136 = arith.addf %134, %135 : vector<16x128xf32>
    %cst_67 = arith.constant 0.000000e+00 : f32
    %137 = vector.broadcast %cst_67 : f32 to vector<16x128xf32>
    %138 = arith.maximumf %136, %137 : vector<16x128xf32>
    %139 = vector.broadcast %2 : f32 to vector<16x128xf32>
    %140 = arith.mulf %96, %139 : vector<16x128xf32>
    %141 = vector.broadcast %10 : f32 to vector<16x128xf32>
    %142 = arith.mulf %100, %141 : vector<16x128xf32>
    %143 = arith.addf %140, %142 : vector<16x128xf32>
    %144 = vector.broadcast %18 : f32 to vector<16x128xf32>
    %145 = arith.mulf %104, %144 : vector<16x128xf32>
    %146 = arith.addf %143, %145 : vector<16x128xf32>
    %147 = vector.broadcast %26 : f32 to vector<16x128xf32>
    %148 = arith.mulf %108, %147 : vector<16x128xf32>
    %149 = arith.addf %146, %148 : vector<16x128xf32>
    %150 = vector.broadcast %34 : f32 to vector<16x128xf32>
    %151 = arith.addf %149, %150 : vector<16x128xf32>
    %cst_68 = arith.constant 0.000000e+00 : f32
    %152 = vector.broadcast %cst_68 : f32 to vector<16x128xf32>
    %153 = arith.maximumf %151, %152 : vector<16x128xf32>
    %154 = vector.broadcast %3 : f32 to vector<16x128xf32>
    %155 = arith.mulf %96, %154 : vector<16x128xf32>
    %156 = vector.broadcast %11 : f32 to vector<16x128xf32>
    %157 = arith.mulf %100, %156 : vector<16x128xf32>
    %158 = arith.addf %155, %157 : vector<16x128xf32>
    %159 = vector.broadcast %19 : f32 to vector<16x128xf32>
    %160 = arith.mulf %104, %159 : vector<16x128xf32>
    %161 = arith.addf %158, %160 : vector<16x128xf32>
    %162 = vector.broadcast %27 : f32 to vector<16x128xf32>
    %163 = arith.mulf %108, %162 : vector<16x128xf32>
    %164 = arith.addf %161, %163 : vector<16x128xf32>
    %165 = vector.broadcast %35 : f32 to vector<16x128xf32>
    %166 = arith.addf %164, %165 : vector<16x128xf32>
    %cst_69 = arith.constant 0.000000e+00 : f32
    %167 = vector.broadcast %cst_69 : f32 to vector<16x128xf32>
    %168 = arith.maximumf %166, %167 : vector<16x128xf32>
    %169 = vector.broadcast %4 : f32 to vector<16x128xf32>
    %170 = arith.mulf %96, %169 : vector<16x128xf32>
    %171 = vector.broadcast %12 : f32 to vector<16x128xf32>
    %172 = arith.mulf %100, %171 : vector<16x128xf32>
    %173 = arith.addf %170, %172 : vector<16x128xf32>
    %174 = vector.broadcast %20 : f32 to vector<16x128xf32>
    %175 = arith.mulf %104, %174 : vector<16x128xf32>
    %176 = arith.addf %173, %175 : vector<16x128xf32>
    %177 = vector.broadcast %28 : f32 to vector<16x128xf32>
    %178 = arith.mulf %108, %177 : vector<16x128xf32>
    %179 = arith.addf %176, %178 : vector<16x128xf32>
    %180 = vector.broadcast %36 : f32 to vector<16x128xf32>
    %181 = arith.addf %179, %180 : vector<16x128xf32>
    %cst_70 = arith.constant 0.000000e+00 : f32
    %182 = vector.broadcast %cst_70 : f32 to vector<16x128xf32>
    %183 = arith.maximumf %181, %182 : vector<16x128xf32>
    %184 = vector.broadcast %5 : f32 to vector<16x128xf32>
    %185 = arith.mulf %96, %184 : vector<16x128xf32>
    %186 = vector.broadcast %13 : f32 to vector<16x128xf32>
    %187 = arith.mulf %100, %186 : vector<16x128xf32>
    %188 = arith.addf %185, %187 : vector<16x128xf32>
    %189 = vector.broadcast %21 : f32 to vector<16x128xf32>
    %190 = arith.mulf %104, %189 : vector<16x128xf32>
    %191 = arith.addf %188, %190 : vector<16x128xf32>
    %192 = vector.broadcast %29 : f32 to vector<16x128xf32>
    %193 = arith.mulf %108, %192 : vector<16x128xf32>
    %194 = arith.addf %191, %193 : vector<16x128xf32>
    %195 = vector.broadcast %37 : f32 to vector<16x128xf32>
    %196 = arith.addf %194, %195 : vector<16x128xf32>
    %cst_71 = arith.constant 0.000000e+00 : f32
    %197 = vector.broadcast %cst_71 : f32 to vector<16x128xf32>
    %198 = arith.maximumf %196, %197 : vector<16x128xf32>
    %199 = vector.broadcast %6 : f32 to vector<16x128xf32>
    %200 = arith.mulf %96, %199 : vector<16x128xf32>
    %201 = vector.broadcast %14 : f32 to vector<16x128xf32>
    %202 = arith.mulf %100, %201 : vector<16x128xf32>
    %203 = arith.addf %200, %202 : vector<16x128xf32>
    %204 = vector.broadcast %22 : f32 to vector<16x128xf32>
    %205 = arith.mulf %104, %204 : vector<16x128xf32>
    %206 = arith.addf %203, %205 : vector<16x128xf32>
    %207 = vector.broadcast %30 : f32 to vector<16x128xf32>
    %208 = arith.mulf %108, %207 : vector<16x128xf32>
    %209 = arith.addf %206, %208 : vector<16x128xf32>
    %210 = vector.broadcast %38 : f32 to vector<16x128xf32>
    %211 = arith.addf %209, %210 : vector<16x128xf32>
    %cst_72 = arith.constant 0.000000e+00 : f32
    %212 = vector.broadcast %cst_72 : f32 to vector<16x128xf32>
    %213 = arith.maximumf %211, %212 : vector<16x128xf32>
    %214 = vector.broadcast %7 : f32 to vector<16x128xf32>
    %215 = arith.mulf %96, %214 : vector<16x128xf32>
    %216 = vector.broadcast %15 : f32 to vector<16x128xf32>
    %217 = arith.mulf %100, %216 : vector<16x128xf32>
    %218 = arith.addf %215, %217 : vector<16x128xf32>
    %219 = vector.broadcast %23 : f32 to vector<16x128xf32>
    %220 = arith.mulf %104, %219 : vector<16x128xf32>
    %221 = arith.addf %218, %220 : vector<16x128xf32>
    %222 = vector.broadcast %31 : f32 to vector<16x128xf32>
    %223 = arith.mulf %108, %222 : vector<16x128xf32>
    %224 = arith.addf %221, %223 : vector<16x128xf32>
    %225 = vector.broadcast %39 : f32 to vector<16x128xf32>
    %226 = arith.addf %224, %225 : vector<16x128xf32>
    %cst_73 = arith.constant 0.000000e+00 : f32
    %227 = vector.broadcast %cst_73 : f32 to vector<16x128xf32>
    %228 = arith.maximumf %226, %227 : vector<16x128xf32>
    %229 = vector.broadcast %40 : f32 to vector<16x128xf32>
    %230 = arith.mulf %123, %229 : vector<16x128xf32>
    %231 = vector.broadcast %44 : f32 to vector<16x128xf32>
    %232 = arith.mulf %138, %231 : vector<16x128xf32>
    %233 = arith.addf %230, %232 : vector<16x128xf32>
    %234 = vector.broadcast %48 : f32 to vector<16x128xf32>
    %235 = arith.mulf %153, %234 : vector<16x128xf32>
    %236 = arith.addf %233, %235 : vector<16x128xf32>
    %237 = vector.broadcast %52 : f32 to vector<16x128xf32>
    %238 = arith.mulf %168, %237 : vector<16x128xf32>
    %239 = arith.addf %236, %238 : vector<16x128xf32>
    %240 = vector.broadcast %56 : f32 to vector<16x128xf32>
    %241 = arith.mulf %183, %240 : vector<16x128xf32>
    %242 = arith.addf %239, %241 : vector<16x128xf32>
    %243 = vector.broadcast %60 : f32 to vector<16x128xf32>
    %244 = arith.mulf %198, %243 : vector<16x128xf32>
    %245 = arith.addf %242, %244 : vector<16x128xf32>
    %246 = vector.broadcast %64 : f32 to vector<16x128xf32>
    %247 = arith.mulf %213, %246 : vector<16x128xf32>
    %248 = arith.addf %245, %247 : vector<16x128xf32>
    %249 = vector.broadcast %68 : f32 to vector<16x128xf32>
    %250 = arith.mulf %228, %249 : vector<16x128xf32>
    %251 = arith.addf %248, %250 : vector<16x128xf32>
    %252 = vector.broadcast %72 : f32 to vector<16x128xf32>
    %253 = arith.addf %251, %252 : vector<16x128xf32>
    %cst_74 = arith.constant 0.000000e+00 : f32
    %254 = vector.broadcast %cst_74 : f32 to vector<16x128xf32>
    %255 = arith.maximumf %253, %254 : vector<16x128xf32>
    %256 = vector.broadcast %41 : f32 to vector<16x128xf32>
    %257 = arith.mulf %123, %256 : vector<16x128xf32>
    %258 = vector.broadcast %45 : f32 to vector<16x128xf32>
    %259 = arith.mulf %138, %258 : vector<16x128xf32>
    %260 = arith.addf %257, %259 : vector<16x128xf32>
    %261 = vector.broadcast %49 : f32 to vector<16x128xf32>
    %262 = arith.mulf %153, %261 : vector<16x128xf32>
    %263 = arith.addf %260, %262 : vector<16x128xf32>
    %264 = vector.broadcast %53 : f32 to vector<16x128xf32>
    %265 = arith.mulf %168, %264 : vector<16x128xf32>
    %266 = arith.addf %263, %265 : vector<16x128xf32>
    %267 = vector.broadcast %57 : f32 to vector<16x128xf32>
    %268 = arith.mulf %183, %267 : vector<16x128xf32>
    %269 = arith.addf %266, %268 : vector<16x128xf32>
    %270 = vector.broadcast %61 : f32 to vector<16x128xf32>
    %271 = arith.mulf %198, %270 : vector<16x128xf32>
    %272 = arith.addf %269, %271 : vector<16x128xf32>
    %273 = vector.broadcast %65 : f32 to vector<16x128xf32>
    %274 = arith.mulf %213, %273 : vector<16x128xf32>
    %275 = arith.addf %272, %274 : vector<16x128xf32>
    %276 = vector.broadcast %69 : f32 to vector<16x128xf32>
    %277 = arith.mulf %228, %276 : vector<16x128xf32>
    %278 = arith.addf %275, %277 : vector<16x128xf32>
    %279 = vector.broadcast %73 : f32 to vector<16x128xf32>
    %280 = arith.addf %278, %279 : vector<16x128xf32>
    %cst_75 = arith.constant 0.000000e+00 : f32
    %281 = vector.broadcast %cst_75 : f32 to vector<16x128xf32>
    %282 = arith.maximumf %280, %281 : vector<16x128xf32>
    %283 = vector.broadcast %42 : f32 to vector<16x128xf32>
    %284 = arith.mulf %123, %283 : vector<16x128xf32>
    %285 = vector.broadcast %46 : f32 to vector<16x128xf32>
    %286 = arith.mulf %138, %285 : vector<16x128xf32>
    %287 = arith.addf %284, %286 : vector<16x128xf32>
    %288 = vector.broadcast %50 : f32 to vector<16x128xf32>
    %289 = arith.mulf %153, %288 : vector<16x128xf32>
    %290 = arith.addf %287, %289 : vector<16x128xf32>
    %291 = vector.broadcast %54 : f32 to vector<16x128xf32>
    %292 = arith.mulf %168, %291 : vector<16x128xf32>
    %293 = arith.addf %290, %292 : vector<16x128xf32>
    %294 = vector.broadcast %58 : f32 to vector<16x128xf32>
    %295 = arith.mulf %183, %294 : vector<16x128xf32>
    %296 = arith.addf %293, %295 : vector<16x128xf32>
    %297 = vector.broadcast %62 : f32 to vector<16x128xf32>
    %298 = arith.mulf %198, %297 : vector<16x128xf32>
    %299 = arith.addf %296, %298 : vector<16x128xf32>
    %300 = vector.broadcast %66 : f32 to vector<16x128xf32>
    %301 = arith.mulf %213, %300 : vector<16x128xf32>
    %302 = arith.addf %299, %301 : vector<16x128xf32>
    %303 = vector.broadcast %70 : f32 to vector<16x128xf32>
    %304 = arith.mulf %228, %303 : vector<16x128xf32>
    %305 = arith.addf %302, %304 : vector<16x128xf32>
    %306 = vector.broadcast %74 : f32 to vector<16x128xf32>
    %307 = arith.addf %305, %306 : vector<16x128xf32>
    %cst_76 = arith.constant 0.000000e+00 : f32
    %308 = vector.broadcast %cst_76 : f32 to vector<16x128xf32>
    %309 = arith.maximumf %307, %308 : vector<16x128xf32>
    %310 = vector.broadcast %43 : f32 to vector<16x128xf32>
    %311 = arith.mulf %123, %310 : vector<16x128xf32>
    %312 = vector.broadcast %47 : f32 to vector<16x128xf32>
    %313 = arith.mulf %138, %312 : vector<16x128xf32>
    %314 = arith.addf %311, %313 : vector<16x128xf32>
    %315 = vector.broadcast %51 : f32 to vector<16x128xf32>
    %316 = arith.mulf %153, %315 : vector<16x128xf32>
    %317 = arith.addf %314, %316 : vector<16x128xf32>
    %318 = vector.broadcast %55 : f32 to vector<16x128xf32>
    %319 = arith.mulf %168, %318 : vector<16x128xf32>
    %320 = arith.addf %317, %319 : vector<16x128xf32>
    %321 = vector.broadcast %59 : f32 to vector<16x128xf32>
    %322 = arith.mulf %183, %321 : vector<16x128xf32>
    %323 = arith.addf %320, %322 : vector<16x128xf32>
    %324 = vector.broadcast %63 : f32 to vector<16x128xf32>
    %325 = arith.mulf %198, %324 : vector<16x128xf32>
    %326 = arith.addf %323, %325 : vector<16x128xf32>
    %327 = vector.broadcast %67 : f32 to vector<16x128xf32>
    %328 = arith.mulf %213, %327 : vector<16x128xf32>
    %329 = arith.addf %326, %328 : vector<16x128xf32>
    %330 = vector.broadcast %71 : f32 to vector<16x128xf32>
    %331 = arith.mulf %228, %330 : vector<16x128xf32>
    %332 = arith.addf %329, %331 : vector<16x128xf32>
    %333 = vector.broadcast %75 : f32 to vector<16x128xf32>
    %334 = arith.addf %332, %333 : vector<16x128xf32>
    %cst_77 = arith.constant 0.000000e+00 : f32
    %335 = vector.broadcast %cst_77 : f32 to vector<16x128xf32>
    %336 = arith.maximumf %334, %335 : vector<16x128xf32>
    %337 = vector.broadcast %78 : f32 to vector<16x128xf32>
    %338 = arith.mulf %255, %337 : vector<16x128xf32>
    %339 = vector.broadcast %81 : f32 to vector<16x128xf32>
    %340 = arith.mulf %282, %339 : vector<16x128xf32>
    %341 = arith.addf %338, %340 : vector<16x128xf32>
    %342 = vector.broadcast %84 : f32 to vector<16x128xf32>
    %343 = arith.mulf %309, %342 : vector<16x128xf32>
    %344 = arith.addf %341, %343 : vector<16x128xf32>
    %345 = vector.broadcast %87 : f32 to vector<16x128xf32>
    %346 = arith.mulf %336, %345 : vector<16x128xf32>
    %347 = arith.addf %344, %346 : vector<16x128xf32>
    %348 = vector.broadcast %90 : f32 to vector<16x128xf32>
    %349 = arith.addf %347, %348 : vector<16x128xf32>
    %350 = arith.negf %349 : vector<16x128xf32>
    %351 = math.exp %350 : vector<16x128xf32>
    %cst_78 = arith.constant 1.000000e+00 : f32
    %352 = vector.broadcast %cst_78 : f32 to vector<16x128xf32>
    %353 = arith.addf %352, %351 : vector<16x128xf32>
    %354 = arith.divf %352, %353 : vector<16x128xf32>
    %355 = arith.index_cast %92 : i32 to index
    %c0_79 = arith.constant 0 : index
    %356 = vector.load %arg8[%355, %c0_79] : memref<16x128xf32, #tpu.memory_space<vmem>>, vector<16x128xf32>
    tpu.vector_store %arg8[%355, %c0_79], %354 {strides = array<i32>} : memref<16x128xf32, #tpu.memory_space<vmem>>, vector<16x128xf32>,
    %c1_i32_80 = arith.constant 1 : i32
    return
  }
  func.func @transform_0(%arg0: i32) -> (i32, i32, i32) {
    %c0_i32 = arith.constant 0 : i32
    %c0_i32_0 = arith.constant 0 : i32
    %c0_i32_1 = arith.constant 0 : i32
    return %c0_i32, %arg0, %c0_i32_0 : i32, i32, i32
  }
  func.func @transform_1(%arg0: i32) -> i32 {
    %c0_i32 = arith.constant 0 : i32
    %c0_i32_0 = arith.constant 0 : i32
    return %c0_i32 : i32
  }
  func.func @transform_2(%arg0: i32) -> i32 {
    %c0_i32 = arith.constant 0 : i32
    %c0_i32_0 = arith.constant 0 : i32
    return %c0_i32 : i32
  }
  func.func @transform_3(%arg0: i32) -> i32 {
    %c0_i32 = arith.constant 0 : i32
    %c0_i32_0 = arith.constant 0 : i32
    return %c0_i32 : i32
  }
  func.func @transform_4(%arg0: i32) -> i32 {
    %c0_i32 = arith.constant 0 : i32
    %c0_i32_0 = arith.constant 0 : i32
    return %c0_i32 : i32
  }
  func.func @transform_5(%arg0: i32) -> i32 {
    %c0_i32 = arith.constant 0 : i32
    %c0_i32_0 = arith.constant 0 : i32
    return %c0_i32 : i32
  }
  func.func @transform_6(%arg0: i32) -> i32 {
    %c0_i32 = arith.constant 0 : i32
    %c0_i32_0 = arith.constant 0 : i32
    return %c0_i32 : i32
  }
  func.func @transform_7(%arg0: i32) -> (i32, i32) {
    %c0_i32 = arith.constant 0 : i32
    %c0_i32_0 = arith.constant 0 : i32
    return %arg0, %c0_i32 : i32, i32
  }
}

</mosaic_0001>

<bundles_post_ra>
// kernel: tpu_custom_call.1
= control target key start
LH: loop header
LB: loop body
LE: loop exit
PB: predicated region body
PF: predicated region fallthrough
CT: control target
= control target key end

     0   :  { %12 = vsyncpa [#allocation3], 0  ;;  %s1411_s0 = inlined_call_operand.hbm [shape: f32[4,16,128], index: 0, kind: input, shape index: {}]   ;;  %s1412_s1 = inlined_call_operand.hbm [shape: f32[32], index: 1, kind: input, shape index: {}]   ;;  %s1413_s2 = inlined_call_operand.vmem [shape: f32[8], index: 2, kind: input, shape index: {}]   ;;  %s1414_s3 = inlined_call_operand.vmem [shape: f32[32], index: 3, kind: input, shape index: {}]   ;;  %s1415_s4 = inlined_call_operand.vmem [shape: f32[4], index: 4, kind: input, shape index: {}]   ;;  %s1416_s5 = inlined_call_operand.vmem [shape: f32[8], index: 5, kind: input, shape index: {}]   ;;  %s1417_s6 = inlined_call_operand.vmem [shape: f32[2], index: 6, kind: input, shape index: {}]   ;;  %s1418_s7 = inlined_call_operand.hbm [shape: f32[16,128], index: 7, kind: output, shape index: {}]  }
   0x1   :  { %13 = vsyncpa [#allocation5], 0 }
   0x2   :  { %14 = vsyncpa [#allocation6], 0 }
   0x3   :  { %15 = vsyncpa [#allocation10], 0 }
   0x4   :  { %16 = vsyncpa [#allocation13], 0  ;;  %s54_s26 = sshll.u32 %s1414_s3, 4  ;;  %s55_s26 = int_to_ptr.vmem [resolvable:$true] %s54_s26 }
   0x5   :  { %17 = vsyncpa [#allocation4], 0  ;;  %s72_s29 = sshll.u32 %s1416_s5, 4  ;;  %s888_s30 = smov [#allocation9]   ;;  %s73_s29 = int_to_ptr.vmem [resolvable:$true] %s72_s29 }
   0x6   :  { %57 = dma.vmem_to_smem %s55_s26, 16, %s888_s30, [#allocation10]  }
   0x7   :  { %s889_s8 = smov [#allocation12]   ;;  %s22_s11 = sshll.u32 %s1411_s0, 4  ;;  %s23_s11 = int_to_ptr.hbm [resolvable:$true] %s22_s11 }
   0x8   :  { %75 = dma.vmem_to_smem %s73_s29, 16, %s889_s8, [#allocation13]  }
   0x9   :  { %s890_s12 = smov [#allocation2]   ;;  %s36_s15 = sshll.u32 %s1412_s1, 4  ;;  %s37_s15 = int_to_ptr.hbm [resolvable:$true] %s36_s15 }
   0xa   :  { %s24_s13 = sshll.u32 %s890_s12, 4  ;;  %s891_s16 = smov 128   ;;  %s25_s13 = int_to_ptr.vmem [resolvable:$true] %s24_s13 }
   0xb   :  { %s892_s17 = smov 8   ;;  %s893_s5 = smov [#allocation7]  }
   0xc   :  { %30 = dma.hbm_to_vmem [thread:$0]  %s23_s11, 1024, %s25_s13, [#allocation3], %s891_s16, %s891_s16, %s892_s17  }
   0xd   :  { %39 = dma.hbm_to_smem %s37_s15, 16, %s893_s5, [#allocation5]  }
   0xe   :  { %s45_s0 = sshll.u32 %s1413_s2, 4  ;;  %s63_s22 = sshll.u32 %s1415_s4, 4  ;;  %s46_s0 = int_to_ptr.vmem [resolvable:$true] %s45_s0  ;;  %s64_s22 = int_to_ptr.vmem [resolvable:$true] %s63_s22 }
   0xf   :  { %s894_s23 = smov [#allocation8]   ;;  %s895_s1 = smov [#allocation11]  }
  0x10   :  { %48 = dma.vmem_to_smem %s46_s0, 16, %s894_s23, [#allocation6]  }
  0x11   :  { %66 = dma.vmem_to_smem %s64_s22, 16, %s895_s1, [#allocation10]  }
  0x12   :  { %s81_s26 = sshll.u32 %s1417_s6, 4  ;;  %s896_s27 = smov [#allocation14]   ;;  %s82_s26 = int_to_ptr.vmem [resolvable:$true] %s81_s26 }
  0x13   :  { %84 = dma.vmem_to_smem %s82_s26, 16, %s896_s27, [#allocation13]  }
  0x14   :  { %876 = dma.done.wait [#allocation3], 1024  }
  0x15   :  { %877 = vsyncadd [#allocation3], 4294966272 }
  0x16   :  { %878 = dma.done.wait [#allocation5], 16  }
  0x17   :  { %879 = vsyncadd [#allocation5], 4294967280 }
  0x18   :  { %880 = dma.done.wait [#allocation6], 16  }
  0x19   :  { %881 = vsyncadd [#allocation6], 4294967280 }
  0x1a   :  { %882 = dma.done.wait [#allocation10], 32  }
  0x1b   :  { %883 = vsyncadd [#allocation10], 4294967264 }
  0x1c   :  { %884 = dma.done.wait [#allocation13], 32  }
  0x1d   :  { %885 = vsyncadd [#allocation13], 4294967264 }
  0x1e   :  { %113 = sfence }
  0x1f   :  { %s114_s2 = sld [smem:[#allocation7]]  ;;  %v974_v0 = vld [vmem:[#allocation2] sm:$0xff]  ;;  %v976_v1 = vld [vmem:[#allocation2 + $0x8] sm:$0xff]  ;;  %v978_v2 = vld [vmem:[#allocation2 + $0x10] sm:$0xff] }
  0x20   :  { %s656_s4 = sld [smem:[#allocation7 + $0x1]]  ;;  %v983_v7 = vld [vmem:[#allocation2 + $0x18] sm:$0xff]  ;;  %v991_v12 = vld [vmem:[#allocation2 + $0x20] sm:$0xff]  ;;  %v993_v13 = vld [vmem:[#allocation2 + $0x28] sm:$0xff] }
  0x21   :  { %s663_s28 = sld [smem:[#allocation7 + $0x8]]  ;;  %v1005_v22 = vld [vmem:[#allocation2 + $0x30] sm:$0xff]  ;;  %v1007_v23 = vld [vmem:[#allocation2 + $0x38] sm:$0xff] }
  0x22   :  { %s962_s29 = sld [smem:[#allocation7 + $0x9]] }
  0x23   :  { %s671_s6 = sld [smem:[#allocation7 + $0x10]] }
  0x24   :  { %s964_s30 = sld [smem:[#allocation7 + $0x2]] }
  0x25   :  { %s966_s8 = sld [smem:[#allocation7 + $0x11]]  ;;  %v216_v3 = vstv %s114_s2 }
  0x26   :  { %s968_s9 = sld [smem:[#allocation7 + $0xa]]  ;;  %v239_v5 = vstv %s656_s4  ;;  %v217_v8 = vmul.f32 %v216_v3, %v974_v0  ;;  %v218_v9 = vmul.f32 %v216_v3, %v976_v1 }
  0x27   :  { %s970_s10 = sld [smem:[#allocation7 + $0x12]]  ;;  %v219_v4 = vstv %s663_s28  ;;  %v240_v11 = vmul.f32 %v239_v5, %v974_v0  ;;  %v241_v16 = vmul.f32 %v239_v5, %v976_v1 }
  0x28   :  { %s972_s11 = sld [smem:[#allocation7 + $0x18]]  ;;  %v242_v6 = vstv %s962_s29  ;;  %v220_v10 = vmul.f32 %v219_v4, %v978_v2  ;;  %v221_v14 = vmul.f32 %v219_v4, %v983_v7 }
  0x29   :  { %s981_s12 = sld [smem:[#allocation7 + $0x19]]  ;;  %v224_v15 = vstv %s671_s6  ;;  %v243_v17 = vmul.f32 %v242_v6, %v978_v2  ;;  %v244_v21 = vmul.f32 %v242_v6, %v983_v7 }
  0x2a   :  { %s989_s13 = sld [smem:[#allocation7 + $0x1a]]  ;;  %v222_v18 = vadd.f32 %v220_v10, %v217_v8  ;;  %v225_v19 = vmul.f32 %v224_v15, %v991_v12  ;;  %v226_v20 = vmul.f32 %v224_v15, %v993_v13  ;;  %v223_v24 = vadd.f32 %v221_v14, %v218_v9 }
  0x2b   :  { %s998_s3 = sld [smem:[#allocation7 + $0x3]]  ;;  %v245_v25 = vadd.f32 %v243_v17, %v240_v11  ;;  %v247_v26 = vstv %s966_s8  ;;  %v262_v27 = vstv %s964_s30  ;;  %v246_v29 = vadd.f32 %v244_v21, %v241_v16 }
  0x2c   :  { %s1003_s14 = sld [smem:[#allocation7 + $0xb]]  ;;  %v227_v28 = vadd.f32 %v225_v19, %v222_v18  ;;  %v248_v30 = vmul.f32 %v247_v26, %v991_v12  ;;  %v249_v31 = vmul.f32 %v247_v26, %v993_v13  ;;  %v228_v32 = vadd.f32 %v226_v20, %v223_v24 }
  0x2d   :  { %s1013_s15 = sld [smem:[#allocation7 + $0x13]]  ;;  %v263_v34 = vmul.f32 %v262_v27, %v974_v0  ;;  %v264_v35 = vmul.f32 %v262_v27, %v976_v1  ;;  %v265_v41 = vstv %s968_s9  ;;  %v270_v42 = vstv %s970_s10 }
  0x2e   :  { %v229_v33 = vstv %s972_s11  ;;  %s1018_s5 = sld [smem:[#allocation7 + $0x1b]]  ;;  %v250_v38 = vadd.f32 %v248_v30, %v245_v25  ;;  %v251_v39 = vadd.f32 %v249_v31, %v246_v29  ;;  %v266_v48 = vmul.f32 %v265_v41, %v978_v2 }
  0x2f   :  { %v230_v36 = vmul.f32 %v229_v33, %v1005_v22  ;;  %v231_v37 = vmul.f32 %v229_v33, %v1007_v23  ;;  %s1022_s18 = sld [smem:[#allocation8]]  ;;  %v252_v40 = vstv %s981_s12  ;;  %v267_v49 = vmul.f32 %v265_v41, %v983_v7 }
  0x30   :  { %v275_v43 = vstv %s989_s13  ;;  %s1028_s19 = sld [smem:[#allocation8 + $0x1]]  ;;  %v253_v46 = vmul.f32 %v252_v40, %v1005_v22  ;;  %v254_v47 = vmul.f32 %v252_v40, %v1007_v23  ;;  %v271_v50 = vmul.f32 %v270_v42, %v991_v12 }
  0x31   :  { %v232_v44 = vadd.f32 %v230_v36, %v227_v28  ;;  %v233_v45 = vadd.f32 %v231_v37, %v228_v32  ;;  %s1032_s0 = sld [smem:[#allocation8 + $0x2]]  ;;  %v272_v51 = vmul.f32 %v270_v42, %v993_v13  ;;  %v276_v54 = vmul.f32 %v275_v43, %v1005_v22 }
  0x32   :  { %s1038_s20 = sld [smem:[#allocation8 + $0x3]]  ;;  %v255_v52 = vadd.f32 %v253_v46, %v250_v38  ;;  %v256_v53 = vadd.f32 %v254_v47, %v251_v39  ;;  %v277_v55 = vmul.f32 %v275_v43, %v1007_v23  ;;  %v268_v56 = vadd.f32 %v266_v48, %v263_v34 }
  0x33   :  { %s1042_s21 = sld [smem:[#allocation7 + $0x4]]  ;;  %v269_v57 = vadd.f32 %v267_v49, %v264_v35  ;;  %v285_v58 = vstv %s998_s3  ;;  %v288_v59 = vstv %s1003_s14  ;;  %v293_v6 = vstv %s1013_s15 }
  0x34   :  { %s1046_s22 = sld [smem:[#allocation7 + $0xc]]  ;;  %v286_v60 = vmul.f32 %v285_v58, %v974_v0  ;;  %v287_v61 = vmul.f32 %v285_v58, %v976_v1  ;;  %v289_v62 = vmul.f32 %v288_v59, %v978_v2  ;;  %v290_v63 = vmul.f32 %v288_v59, %v983_v7 }
  0x35   :  { %s1052_s23 = sld [smem:[#allocation7 + $0x14]]  ;;  %v234_v3 = vstv %s1022_s18  ;;  %v273_v4 = vadd.f32 %v271_v50, %v268_v56  ;;  %v274_v5 = vadd.f32 %v272_v51, %v269_v57  ;;  %v294_v28 = vmul.f32 %v293_v6, %v991_v12 }
  0x36   :  { %s1056_s1 = sld [smem:[#allocation7 + $0x1c]]  ;;  %v235_v8 = vadd.f32 %v234_v3, %v232_v44  ;;  %v236_v9 = vadd.f32 %v234_v3, %v233_v45  ;;  %v257_v10 = vstv %s1028_s19  ;;  %v291_v11 = vadd.f32 %v289_v62, %v286_v60 }
  0x37   :  { %v258_v14 = vadd.f32 %v257_v10, %v255_v52  ;;  %v259_v15 = vadd.f32 %v257_v10, %v256_v53  ;;  %v278_v16 = vadd.f32 %v276_v54, %v273_v4  ;;  %v279_v17 = vadd.f32 %v277_v55, %v274_v5  ;;  %s1059_s24 = sld [smem:[#allocation7 + $0x5]] }
  0x38   :  { %v1061_v18 = vmax.f32 %v235_v8, 0.0  ;;  %v1063_v19 = vmax.f32 %v236_v9, 0.0  ;;  %v280_v20 = vstv %s1032_s0  ;;  %v292_v21 = vadd.f32 %v290_v63, %v287_v61  ;;  %s1066_s25 = sld [smem:[#allocation8 + $0x4]] }
  0x39   :  { %v1068_v24 = vmax.f32 %v258_v14, 0.0  ;;  %v1070_v25 = vmax.f32 %v259_v15, 0.0  ;;  %v281_v26 = vadd.f32 %v280_v20, %v278_v16  ;;  %v282_v27 = vadd.f32 %v280_v20, %v279_v17  ;;  %s1072_s26 = sld [smem:[#allocation7 + $0xd]] }
  0x3a   :  { %v295_v29 = vmul.f32 %v293_v6, %v993_v13  ;;  %v298_v30 = vstv %s1018_s5  ;;  %v303_v31 = vstv %s1038_s20  ;;  %s1078_s27 = sld [smem:[#allocation7 + $0x15]]  ;;  %v296_v36 = vadd.f32 %v294_v28, %v291_v11 }
  0x3b   :  { %v1080_v32 = vmax.f32 %v281_v26, 0.0  ;;  %v1082_v33 = vmax.f32 %v282_v27, 0.0  ;;  %v299_v34 = vmul.f32 %v298_v30, %v1005_v22  ;;  %v300_v35 = vmul.f32 %v298_v30, %v1007_v23  ;;  %s1086_s2 = sld [smem:[#allocation7 + $0x1d]] }
  0x3c   :  { %v297_v37 = vadd.f32 %v295_v29, %v292_v21  ;;  %v308_v38 = vstv %s1042_s21  ;;  %v311_v39 = vstv %s1046_s22  ;;  %s1090_s4 = sld [smem:[#allocation8 + $0x5]]  ;;  %v316_v46 = vstv %s1052_s23 }
  0x3d   :  { %v309_v40 = vmul.f32 %v308_v38, %v974_v0  ;;  %v310_v41 = vmul.f32 %v308_v38, %v976_v1  ;;  %v312_v42 = vmul.f32 %v311_v39, %v978_v2  ;;  %v313_v43 = vmul.f32 %v311_v39, %v983_v7  ;;  %s1096_s28 = sld [smem:[#allocation7 + $0x6]] }
  0x3e   :  { %v301_v44 = vadd.f32 %v299_v34, %v296_v36  ;;  %v302_v45 = vadd.f32 %v300_v35, %v297_v37  ;;  %v321_v47 = vstv %s1056_s1  ;;  %s1100_s29 = sld [smem:[#allocation7 + $0xe]]  ;;  %v317_v50 = vmul.f32 %v316_v46, %v991_v12 }
  0x3f   :  { %v314_v48 = vadd.f32 %v312_v42, %v309_v40  ;;  %v315_v49 = vadd.f32 %v313_v43, %v310_v41  ;;  %v318_v51 = vmul.f32 %v316_v46, %v993_v13  ;;  %s1104_s6 = sld [smem:[#allocation7 + $0x16]]  ;;  %v322_v54 = vmul.f32 %v321_v47, %v1005_v22 }
  0x40   :  { %v304_v52 = vadd.f32 %v303_v31, %v301_v44  ;;  %v305_v53 = vadd.f32 %v303_v31, %v302_v45  ;;  %v323_v55 = vmul.f32 %v321_v47, %v1007_v23  ;;  %s1108_s30 = sld [smem:[#allocation7 + $0x1e]]  ;;  %v326_v58 = vstv %s1066_s25 }
  0x41   :  { %v319_v56 = vadd.f32 %v317_v50, %v314_v48  ;;  %v320_v57 = vadd.f32 %v318_v51, %v315_v49  ;;  %v331_v59 = vstv %s1059_s24  ;;  %s1118_s8 = sld [smem:[#allocation7 + $0x7]]  ;;  %v334_v5 = vstv %s1072_s26 }
  0x42   :  { %v1112_v60 = vmax.f32 %v304_v52, 0.0  ;;  %v1114_v61 = vmax.f32 %v305_v53, 0.0  ;;  %v332_v62 = vmul.f32 %v331_v59, %v974_v0  ;;  %v333_v63 = vmul.f32 %v331_v59, %v976_v1  ;;  %s1122_s9 = sld [smem:[#allocation8 + $0x6]] }
  0x43   :  { %v324_v3 = vadd.f32 %v322_v54, %v319_v56  ;;  %v325_v4 = vadd.f32 %v323_v55, %v320_v57  ;;  %v339_v6 = vstv %s1078_s27  ;;  %v335_v8 = vmul.f32 %v334_v5, %v978_v2  ;;  %s1128_s10 = sld [smem:[#allocation7 + $0xf]] }
  0x44   :  { %v336_v9 = vmul.f32 %v334_v5, %v983_v7  ;;  %v340_v10 = vmul.f32 %v339_v6, %v991_v12  ;;  %v341_v11 = vmul.f32 %v339_v6, %v993_v13  ;;  %v344_v16 = vstv %s1086_s2  ;;  %s1132_s11 = sld [smem:[#allocation7 + $0x17]] }
  0x45   :  { %v327_v14 = vadd.f32 %v326_v58, %v324_v3  ;;  %v328_v15 = vadd.f32 %v326_v58, %v325_v4  ;;  %v349_v17 = vstv %s1090_s4  ;;  %v337_v20 = vadd.f32 %v335_v8, %v332_v62  ;;  %s1136_s12 = sld [smem:[#allocation7 + $0x1f]] }
  0x46   :  { %v338_v21 = vadd.f32 %v336_v9, %v333_v63  ;;  %v345_v26 = vmul.f32 %v344_v16, %v1005_v22  ;;  %v346_v27 = vmul.f32 %v344_v16, %v1007_v23  ;;  %v354_v30 = vstv %s1096_s28  ;;  %s1144_s13 = sld [smem:[#allocation8 + $0x7]] }
  0x47   :  { %v1138_v28 = vmax.f32 %v327_v14, 0.0  ;;  %v1140_v29 = vmax.f32 %v328_v15, 0.0  ;;  %v357_v31 = vstv %s1100_s29  ;;  %v342_v34 = vadd.f32 %v340_v10, %v337_v20  ;;  %s1148_s3 = sld [smem:[#allocation9]] }
  0x48   :  { %v343_v35 = vadd.f32 %v341_v11, %v338_v21  ;;  %v355_v36 = vmul.f32 %v354_v30, %v974_v0  ;;  %v356_v37 = vmul.f32 %v354_v30, %v976_v1  ;;  %v358_v38 = vmul.f32 %v357_v31, %v978_v2  ;;  %s1154_s14 = sld [smem:[#allocation9 + $0x4]] }
  0x49   :  { %v359_v39 = vmul.f32 %v357_v31, %v983_v7  ;;  %v362_v40 = vstv %s1104_s6  ;;  %v367_v41 = vstv %s1108_s30  ;;  %v347_v42 = vadd.f32 %v345_v26, %v342_v34  ;;  %s1160_s15 = sld [smem:[#allocation9 + $0x8]] }
  0x4a   :  { %v348_v43 = vadd.f32 %v346_v27, %v343_v35  ;;  %v363_v44 = vmul.f32 %v362_v40, %v991_v12  ;;  %v364_v45 = vmul.f32 %v362_v40, %v993_v13  ;;  %v360_v46 = vadd.f32 %v358_v38, %v355_v36  ;;  %s1164_s5 = sld [smem:[#allocation9 + $0xc]] }
  0x4b   :  { %v361_v47 = vadd.f32 %v359_v39, %v356_v37  ;;  %v368_v48 = vmul.f32 %v367_v41, %v1005_v22  ;;  %v369_v49 = vmul.f32 %v367_v41, %v1007_v23  ;;  %v350_v50 = vadd.f32 %v349_v17, %v347_v42  ;;  %s1168_s18 = sld [smem:[#allocation9 + $0x1]] }
  0x4c   :  { %v351_v51 = vadd.f32 %v349_v17, %v348_v43  ;;  %v372_v52 = vstv %s1122_s9  ;;  %v377_v53 = vstv %s1118_s8  ;;  %v365_v54 = vadd.f32 %v363_v44, %v360_v46  ;;  %s1176_s19 = sld [smem:[#allocation9 + $0x10]] }
  0x4d   :  { %v366_v55 = vadd.f32 %v364_v45, %v361_v47  ;;  %v378_v56 = vmul.f32 %v377_v53, %v974_v0  ;;  %v379_v57 = vmul.f32 %v377_v53, %v976_v1  ;;  %v1170_v58 = vmax.f32 %v350_v50, 0.0  ;;  %s1180_s0 = sld [smem:[#allocation9 + $0x14]] }
  0x4e   :  { %v1172_v59 = vmax.f32 %v351_v51, 0.0  ;;  %v380_v62 = vstv %s1128_s10  ;;  %v385_v63 = vstv %s1132_s11  ;;  %v370_v3 = vadd.f32 %v368_v48, %v365_v54  ;;  %s1186_s20 = sld [smem:[#allocation9 + $0x5]] }
  0x4f   :  { %v371_v4 = vadd.f32 %v369_v49, %v366_v55  ;;  %v381_v5 = vmul.f32 %v380_v62, %v978_v2  ;;  %v382_v0 = vmul.f32 %v380_v62, %v983_v7  ;;  %v386_v1 = vmul.f32 %v385_v63, %v991_v12  ;;  %s1188_s21 = sld [smem:[#allocation9 + $0x18]] }
  0x50   :  { %v387_v6 = vmul.f32 %v385_v63, %v993_v13  ;;  %v390_v8 = vstv %s1136_s12  ;;  %v395_v9 = vstv %s1144_s13  ;;  %v373_v10 = vadd.f32 %v372_v52, %v370_v3  ;;  %s1194_s22 = sld [smem:[#allocation9 + $0x1c]] }
  0x51   :  { %v374_v11 = vadd.f32 %v372_v52, %v371_v4  ;;  %v383_v14 = vadd.f32 %v381_v5, %v378_v56  ;;  %v384_v15 = vadd.f32 %v382_v0, %v379_v57  ;;  %v391_v2 = vmul.f32 %v390_v8, %v1005_v22  ;;  %s1200_s23 = sld [smem:[#allocation9 + $0x9]] }
  0x52   :  { %v392_v7 = vmul.f32 %v390_v8, %v1007_v23  ;;  %v400_v16 = vstv %s1148_s3  ;;  %v403_v12 = vstv %s1154_s14  ;;  %v1196_v13 = vmax.f32 %v373_v10, 0.0  ;;  %s1206_s1 = sld [smem:[#allocation9 + $0xd]] }
  0x53   :  { %v1198_v17 = vmax.f32 %v374_v11, 0.0  ;;  %v388_v20 = vadd.f32 %v386_v1, %v383_v14  ;;  %v389_v21 = vadd.f32 %v387_v6, %v384_v15  ;;  %v401_v26 = vmul.f32 %v400_v16, %v1061_v18  ;;  %s1210_s24 = sld [smem:[#allocation9 + $0x11]] }
  0x54   :  { %v402_v22 = vmul.f32 %v400_v16, %v1063_v19  ;;  %v404_v23 = vmul.f32 %v403_v12, %v1068_v24  ;;  %v405_v27 = vmul.f32 %v403_v12, %v1070_v25  ;;  %v408_v34 = vstv %s1160_s15  ;;  %s1214_s25 = sld [smem:[#allocation11]] }
  0x55   :  { %v393_v30 = vadd.f32 %v391_v2, %v388_v20  ;;  %v394_v31 = vadd.f32 %v392_v7, %v389_v21  ;;  %v413_v35 = vstv %s1164_s5  ;;  %v409_v38 = vmul.f32 %v408_v34, %v1080_v32  ;;  %s1220_s26 = sld [smem:[#allocation9 + $0x2]] }
  0x56   :  { %v406_v36 = vadd.f32 %v404_v23, %v401_v26  ;;  %v407_v37 = vadd.f32 %v405_v27, %v402_v22  ;;  %v410_v39 = vmul.f32 %v408_v34, %v1082_v33  ;;  %v414_v42 = vmul.f32 %v413_v35, %v1112_v60  ;;  %s1228_s27 = sld [smem:[#allocation9 + $0x15]] }
  0x57   :  { %v396_v40 = vadd.f32 %v395_v9, %v393_v30  ;;  %v397_v41 = vadd.f32 %v395_v9, %v394_v31  ;;  %v415_v43 = vmul.f32 %v413_v35, %v1114_v61  ;;  %v418_v46 = vstv %s1176_s19  ;;  %s1232_s2 = sld [smem:[#allocation9 + $0x19]] }
  0x58   :  { %v411_v44 = vadd.f32 %v409_v38, %v406_v36  ;;  %v412_v45 = vadd.f32 %v410_v39, %v407_v37  ;;  %v423_v47 = vstv %s1180_s0  ;;  %v419_v50 = vmul.f32 %v418_v46, %v1138_v28  ;;  %s1238_s4 = sld [smem:[#allocation9 + $0x3]] }
  0x59   :  { %v1222_v48 = vmax.f32 %v396_v40, 0.0  ;;  %v1224_v49 = vmax.f32 %v397_v41, 0.0  ;;  %v420_v51 = vmul.f32 %v418_v46, %v1140_v29  ;;  %v424_v54 = vmul.f32 %v423_v47, %v1170_v58  ;;  %s1242_s28 = sld [smem:[#allocation9 + $0x6]] }
  0x5a   :  { %v416_v52 = vadd.f32 %v414_v42, %v411_v44  ;;  %v417_v53 = vadd.f32 %v415_v43, %v412_v45  ;;  %v425_v55 = vmul.f32 %v423_v47, %v1172_v59  ;;  %v428_v56 = vstv %s1188_s21  ;;  %s1248_s29 = sld [smem:[#allocation9 + $0x1d]] }
  0x5b   :  { %v433_v57 = vstv %s1194_s22  ;;  %v443_v62 = vstv %s1168_s18  ;;  %v446_v63 = vstv %s1186_s20  ;;  %v429_v5 = vmul.f32 %v428_v56, %v1196_v13  ;;  %s1252_s6 = sld [smem:[#allocation11 + $0x1]] }
  0x5c   :  { %v421_v3 = vadd.f32 %v419_v50, %v416_v52  ;;  %v422_v4 = vadd.f32 %v420_v51, %v417_v53  ;;  %v430_v0 = vmul.f32 %v428_v56, %v1198_v17  ;;  %v434_v1 = vmul.f32 %v433_v57, %v1222_v48  ;;  %s1258_s30 = sld [smem:[#allocation9 + $0xa]] }
  0x5d   :  { %v435_v6 = vmul.f32 %v433_v57, %v1224_v49  ;;  %v438_v8 = vstv %s1214_s25  ;;  %v444_v9 = vmul.f32 %v443_v62, %v1061_v18  ;;  %v445_v14 = vmul.f32 %v443_v62, %v1063_v19  ;;  %s1261_s8 = sld [smem:[#allocation9 + $0x7]] }
  0x5e   :  { %v426_v10 = vadd.f32 %v424_v54, %v421_v3  ;;  %v427_v11 = vadd.f32 %v425_v55, %v422_v4  ;;  %v447_v15 = vmul.f32 %v446_v63, %v1068_v24  ;;  %v448_v2 = vmul.f32 %v446_v63, %v1070_v25  ;;  %s1266_s9 = sld [smem:[#allocation9 + $0xe]] }
  0x5f   :  { %v451_v7 = vstv %s1200_s23  ;;  %v456_v16 = vstv %s1206_s1  ;;  %v461_v12 = vstv %s1210_s24  ;;  %s1269_s10 = sld [smem:[#allocation9 + $0x12]]  ;;  %v466_v40 = vstv %s1228_s27 }
  0x60   :  { %v431_v20 = vadd.f32 %v429_v5, %v426_v10  ;;  %v432_v21 = vadd.f32 %v430_v0, %v427_v11  ;;  %v449_v26 = vadd.f32 %v447_v15, %v444_v9  ;;  %v452_v22 = vmul.f32 %v451_v7, %v1080_v32  ;;  %s1274_s11 = sld [smem:[#allocation9 + $0xb]] }
  0x61   :  { %v450_v23 = vadd.f32 %v448_v2, %v445_v14  ;;  %v453_v27 = vmul.f32 %v451_v7, %v1082_v33  ;;  %v457_v30 = vmul.f32 %v456_v16, %v1112_v60  ;;  %v458_v31 = vmul.f32 %v456_v16, %v1114_v61  ;;  %s1279_s12 = sld [smem:[#allocation9 + $0x16]] }
  0x62   :  { %v436_v34 = vadd.f32 %v434_v1, %v431_v20  ;;  %v437_v35 = vadd.f32 %v435_v6, %v432_v21  ;;  %v454_v36 = vadd.f32 %v452_v22, %v449_v26  ;;  %v462_v37 = vmul.f32 %v461_v12, %v1138_v28  ;;  %s1285_s13 = sld [smem:[#allocation9 + $0x1a]] }
  0x63   :  { %v455_v38 = vadd.f32 %v453_v27, %v450_v23  ;;  %v463_v39 = vmul.f32 %v461_v12, %v1140_v29  ;;  %v471_v41 = vstv %s1232_s2  ;;  %v467_v44 = vmul.f32 %v466_v40, %v1170_v58  ;;  %s1290_s3 = sld [smem:[#allocation9 + $0xf]] }
  0x64   :  { %v1276_v42 = vadd.f32 %v438_v8, %v436_v34  ;;  %v459_v43 = vadd.f32 %v457_v30, %v454_v36  ;;  %v1281_v45 = vadd.f32 %v438_v8, %v437_v35  ;;  %v468_v47 = vmul.f32 %v466_v40, %v1172_v59  ;;  %s1295_s14 = sld [smem:[#allocation9 + $0x1e]] }
  0x65   :  { %v460_v46 = vadd.f32 %v458_v31, %v455_v38  ;;  %v472_v50 = vmul.f32 %v471_v41, %v1196_v13  ;;  %v473_v53 = vmul.f32 %v471_v41, %v1198_v17  ;;  %v476_v54 = vstv %s1248_s29  ;;  %s1300_s15 = sld [smem:[#allocation11 + $0x2]] }
  0x66   :  { %v441_v51 = vmax.f32 %v1276_v42, 0.0  ;;  %v464_v52 = vadd.f32 %v462_v37, %v459_v43  ;;  %v477_v56 = vmul.f32 %v476_v54, %v1222_v48  ;;  %v478_v57 = vmul.f32 %v476_v54, %v1224_v49  ;;  %s1305_s5 = sld [smem:[#allocation9 + $0x13]] }
  0x67   :  { %v465_v55 = vadd.f32 %v463_v39, %v460_v46  ;;  %v481_v62 = vstv %s1252_s6  ;;  %v486_v3 = vstv %s1220_s26  ;;  %v489_v4 = vstv %s1242_s28  ;;  %s1310_s18 = sld [smem:[#allocation9 + $0x17]] }
  0x68   :  { %v469_v63 = vadd.f32 %v467_v44, %v464_v52  ;;  %v494_v5 = vstv %s1258_s30  ;;  %v487_v1 = vmul.f32 %v486_v3, %v1061_v18  ;;  %v488_v6 = vmul.f32 %v486_v3, %v1063_v19  ;;  %s1314_s19 = sld [smem:[#allocation9 + $0x1b]] }
  0x69   :  { %v470_v0 = vadd.f32 %v468_v47, %v465_v55  ;;  %v490_v8 = vmul.f32 %v489_v4, %v1068_v24  ;;  %v491_v10 = vmul.f32 %v489_v4, %v1070_v25  ;;  %v495_v11 = vmul.f32 %v494_v5, %v1080_v32  ;;  %s1318_s0 = sld [smem:[#allocation9 + $0x1f]] }
  0x6a   :  { %v474_v9 = vadd.f32 %v472_v50, %v469_v63  ;;  %v496_v14 = vmul.f32 %v494_v5, %v1082_v33  ;;  %v499_v7 = vstv %s1266_s9  ;;  %v504_v16 = vstv %s1269_s10  ;;  %s1322_s20 = sld [smem:[#allocation12]]  ;;  %s897_s9 = smov [#allocation15]  }
  0x6b   :  { %v475_v15 = vadd.f32 %v473_v53, %v470_v0  ;;  %v492_v2 = vadd.f32 %v490_v8, %v487_v1  ;;  %v493_v20 = vadd.f32 %v491_v10, %v488_v6  ;;  %v500_v21 = vmul.f32 %v499_v7, %v1112_v60  ;;  %s1328_s21 = sld [smem:[#allocation12 + $0x1]]  ;;  %s637_s10 = sshll.u32 %s897_s9, 4  ;;  %s638_s10 = int_to_ptr.vmem [resolvable:$true] %s637_s10 }
  0x6c   :  { %v479_v12 = vadd.f32 %v477_v56, %v474_v9  ;;  %v501_v26 = vmul.f32 %v499_v7, %v1114_v61  ;;  %v505_v27 = vmul.f32 %v504_v16, %v1138_v28  ;;  %v506_v30 = vmul.f32 %v504_v16, %v1140_v29  ;;  %s1334_s22 = sld [smem:[#allocation12 + $0x2]] }
  0x6d   :  { %v480_v22 = vadd.f32 %v478_v57, %v475_v15  ;;  %v497_v23 = vadd.f32 %v495_v11, %v492_v2  ;;  %v498_v34 = vadd.f32 %v496_v14, %v493_v20  ;;  %v509_v35 = vstv %s1279_s12  ;;  %s1339_s23 = sld [smem:[#allocation12 + $0x3]] }
  0x6e   :  { %v1324_v31 = vadd.f32 %v481_v62, %v479_v12  ;;  %v514_v36 = vstv %s1285_s13  ;;  %v442_v37 = vmax.f32 %v1281_v45, 0.0  ;;  %v510_v40 = vmul.f32 %v509_v35, %v1170_v58  ;;  %s1344_s1 = sld [smem:[#allocation12 + $0x4]]  ;;  %s639_s13 = sshll.u32 %s1418_s7, 4  ;;  %s640_s13 = int_to_ptr.hbm [resolvable:$true] %s639_s13 }
  0x6f   :  { %v1331_v38 = vadd.f32 %v481_v62, %v480_v22  ;;  %v502_v39 = vadd.f32 %v500_v21, %v497_v23  ;;  %v503_v43 = vadd.f32 %v501_v26, %v498_v34  ;;  %v511_v44 = vmul.f32 %v509_v35, %v1172_v59  ;;  %s1349_s24 = sld [smem:[#allocation12 + $0x5]] }
  0x70   :  { %v484_v41 = vmax.f32 %v1324_v31, 0.0  ;;  %v515_v46 = vmul.f32 %v514_v36, %v1196_v13  ;;  %v516_v50 = vmul.f32 %v514_v36, %v1198_v17  ;;  %v519_v52 = vstv %s1295_s14  ;;  %s1357_s25 = sld [smem:[#allocation11 + $0x3]] }
  0x71   :  { %v507_v47 = vadd.f32 %v505_v27, %v502_v39  ;;  %v524_v53 = vstv %s1300_s15  ;;  %v508_v54 = vadd.f32 %v506_v30, %v503_v43  ;;  %v520_v55 = vmul.f32 %v519_v52, %v1222_v48  ;;  %s1362_s26 = sld [smem:[#allocation12 + $0x6]] }
  0x72   :  { %v521_v56 = vmul.f32 %v519_v52, %v1224_v49  ;;  %v529_v57 = vstv %s1238_s4  ;;  %v532_v4 = vstv %s1261_s8  ;;  %v537_v6 = vstv %s1274_s11  ;;  %s192_s27 = ssub.f32 %s1322_s20, %s1328_s21 }
  0x73   :  { %v512_v62 = vadd.f32 %v510_v40, %v507_v47  ;;  %v530_v63 = vmul.f32 %v529_v57, %v1061_v18  ;;  %v531_v3 = vmul.f32 %v529_v57, %v1063_v19  ;;  %v513_v5 = vadd.f32 %v511_v44, %v508_v54  ;;  %s1370_s2 = sld [smem:[#allocation12 + $0x7]] }
  0x74   :  { %v533_v0 = vmul.f32 %v532_v4, %v1068_v24  ;;  %v534_v1 = vmul.f32 %v532_v4, %v1070_v25  ;;  %v538_v9 = vmul.f32 %v537_v6, %v1080_v32  ;;  %v539_v18 = vmul.f32 %v537_v6, %v1082_v33  ;;  %s195_s4 = ssub.f32 %s1334_s22, %s1339_s23 }
  0x75   :  { %v517_v8 = vadd.f32 %v515_v46, %v512_v62  ;;  %v542_v10 = vstv %s1290_s3  ;;  %v518_v19 = vadd.f32 %v516_v50, %v513_v5  ;;  %v547_v2 = vstv %s1305_s5  ;;  %s198_s28 = ssub.f32 %s1344_s1, %s1349_s24 }
  0x76   :  { %v535_v11 = vadd.f32 %v533_v0, %v530_v63  ;;  %v536_v24 = vadd.f32 %v534_v1, %v531_v3  ;;  %v543_v14 = vmul.f32 %v542_v10, %v1112_v60  ;;  %v544_v15 = vmul.f32 %v542_v10, %v1114_v61  ;;  %s1384_s29 = sld [smem:[#allocation14]] }
  0x77   :  { %v522_v25 = vadd.f32 %v520_v55, %v517_v8  ;;  %v552_v32 = vstv %s1310_s18  ;;  %v523_v33 = vadd.f32 %v521_v56, %v518_v19  ;;  %v548_v12 = vmul.f32 %v547_v2, %v1138_v28  ;;  %s1387_s6 = sld [smem:[#allocation14 + $0x1]] }
  0x78   :  { %v540_v7 = vadd.f32 %v538_v9, %v535_v11  ;;  %v541_v16 = vadd.f32 %v539_v18, %v536_v24  ;;  %v549_v60 = vmul.f32 %v547_v2, %v1140_v29  ;;  %v553_v21 = vmul.f32 %v552_v32, %v1170_v58 }
  0x79   :  { %v525_v20 = vadd.f32 %v524_v53, %v522_v25  ;;  %v554_v61 = vmul.f32 %v552_v32, %v1172_v59  ;;  %v526_v26 = vadd.f32 %v524_v53, %v523_v33  ;;  %v557_v27 = vstv %s1314_s19  ;;  %s201_s30 = ssub.f32 %s1362_s26, %s1370_s2 }
  0x7a   :  { %v545_v22 = vadd.f32 %v543_v14, %v540_v7  ;;  %v546_v23 = vadd.f32 %v544_v15, %v541_v16  ;;  %v485_v30 = vmax.f32 %v1331_v38, 0.0  ;;  %v558_v28 = vmul.f32 %v557_v27, %v1196_v13 }
  0x7b   :  { %v527_v34 = vmax.f32 %v525_v20, 0.0  ;;  %v562_v35 = vstv %s1318_s0  ;;  %v528_v29 = vmax.f32 %v526_v26, 0.0  ;;  %v559_v59 = vmul.f32 %v557_v27, %v1198_v17 }
  0x7c   :  { %v550_v36 = vadd.f32 %v548_v12, %v545_v22  ;;  %v551_v58 = vadd.f32 %v549_v60, %v546_v23  ;;  %v563_v39 = vmul.f32 %v562_v35, %v1222_v48  ;;  %v564_v38 = vmul.f32 %v562_v35, %v1224_v49 }
  0x7d   :  { %v572_v40 = vstv %s192_s27  ;;  %v575_v13 = vstv %s195_s4  ;;  %v580_v48 = vstv %s198_s28  ;;  %v567_v53 = vstv %s1357_s25  ;;  %s204_s8 = ssub.f32 %s1384_s29, %s1387_s6 }
  0x7e   :  { %v555_v43 = vadd.f32 %v553_v21, %v550_v36  ;;  %v556_v44 = vadd.f32 %v554_v61, %v551_v58  ;;  %v573_v46 = vmul.f32 %v572_v40, %v441_v51  ;;  %v574_v47 = vmul.f32 %v572_v40, %v442_v37 }
  0x7f   :  { %v576_v17 = vmul.f32 %v575_v13, %v484_v41  ;;  %v577_v50 = vmul.f32 %v575_v13, %v485_v30  ;;  %v581_v54 = vmul.f32 %v580_v48, %v527_v34  ;;  %v582_v55 = vmul.f32 %v580_v48, %v528_v29 }
  0x80   :  { %v560_v52 = vadd.f32 %v558_v28, %v555_v43  ;;  %v561_v49 = vadd.f32 %v559_v59, %v556_v44  ;;  %v585_v37 = vstv %s201_s30  ;;  %v590_v0 = vstv %s204_s8 }
  0x81   :  { %v578_v42 = vadd.f32 %v576_v17, %v573_v46  ;;  %v579_v51 = vadd.f32 %v577_v50, %v574_v47 }
  0x82   :  { %v565_v56 = vadd.f32 %v563_v39, %v560_v52  ;;  %v566_v57 = vadd.f32 %v564_v38, %v561_v49 }
  0x83   :  { %v583_v3 = vadd.f32 %v581_v54, %v578_v42  ;;  %v584_v41 = vadd.f32 %v582_v55, %v579_v51 }
  0x84   :  { %v568_v62 = vadd.f32 %v567_v53, %v565_v56  ;;  %v569_v45 = vadd.f32 %v567_v53, %v566_v57 }
  0x86   :  { %v570_v31 = vmax.f32 %v568_v62, 0.0  ;;  %v571_v63 = vmax.f32 %v569_v45, 0.0 }
  0x88   :  { %v586_v4 = vmul.f32 %v585_v37, %v570_v31  ;;  %v587_v5 = vmul.f32 %v585_v37, %v571_v63 }
  0x8a   :  { %v588_v1 = vadd.f32 %v586_v4, %v583_v3  ;;  %v589_v6 = vadd.f32 %v587_v5, %v584_v41 }
  0x8c   :  { %v591_v8 = vadd.f32 %v590_v0, %v588_v1  ;;  %v592_v9 = vadd.f32 %v590_v0, %v589_v6 }
  0x8e   :  { %v736_v18 = vmul.f32 -1.442695, %v591_v8  ;;  %v737_v10 = vmul.f32 -1.442695, %v592_v9 }
  0x90   :  { %748 = vpow2.f32 %v736_v18 }
  0x91   :  { %750 = vpow2.f32 %v737_v10 }
  0x96   :  { %v749_v19 = vpop.eup %748 }
  0x97   :  { %v751_v11 = vpop.eup %750  ;;  %v599_v24 = vadd.f32 1.0, %v749_v19 }
  0x98   :  { %v600_v14 = vadd.f32 1.0, %v751_v11 }
  0x99   :  { %752 = vrcp.f32 %v599_v24  ;;  %vm606_vm0 = vweird.f32 %v599_v24  ;;  %v612_v32 = vand.u32 2147483648, %v599_v24  ;;  %v610_v16 = vand.u32 2147483647, %v599_v24 }
  0x9a   :  { %754 = vrcp.f32 %v600_v14  ;;  %v627_v12 = vand.u32 2147483648, %v600_v14  ;;  %vm621_vm2 = vweird.f32 %v600_v14  ;;  %v625_v60 = vand.u32 2147483647, %v600_v14 }
  0x9b   :  { %v613_v61 = vor.u32 1.1754944e-38, %v612_v32  ;;  %vm611_vm5 = vcmp.eq.f32.partialorder %v610_v16, 8.507059e+37 }
  0x9c   :  { %v628_v23 = vor.u32 1.1754944e-38, %v627_v12  ;;  %vm626_vm7 = vcmp.eq.f32.partialorder %v625_v60, 8.507059e+37 }
  0x9f   :  { %v753_v25 = vpop.eup %752 }
  0xa0   :  { %v755_v15 = vpop.eup %754  ;;  %v602_v2 = vmul.f32 %v753_v25, %v599_v24  ;;  %vm607_vm1 = vweird.f32 %v753_v25 }
  0xa1   :  { %v617_v33 = vmul.f32 %v755_v15, %v600_v14  ;;  %vm622_vm3 = vweird.f32 %v755_v15  ;;  %vm608_vm4 = vmor %vm606_vm0, %vm607_vm1 }
  0xa2   :  { %v603_v7 = vsub.f32 1.0, %v602_v2  ;;  %vm623_vm6 = vmor %vm621_vm2, %vm622_vm3 }
  0xa3   :  { %v618_v20 = vsub.f32 1.0, %v617_v33 }
  0xa4   :  { %v604_v21 = vmul.f32 %v753_v25, %v603_v7 }
  0xa5   :  { %v619_v26 = vmul.f32 %v755_v15, %v618_v20 }
  0xa6   :  { %v605_v22 = vadd.f32 %v753_v25, %v604_v21 }
  0xa7   :  { %v620_v27 = vadd.f32 %v755_v15, %v619_v26 }
  0xa8   :  { %v609_v30 = vsel %vm608_vm4, %v753_v25, %v605_v22 }
  0xa9   :  { %v614_v34 = vsel %vm611_vm5, %v613_v61, %v609_v30  ;;  %v624_v28 = vsel %vm623_vm6, %v755_v15, %v620_v27 }
  0xaa   :  { %v629_v35 = vsel %vm626_vm7, %v628_v23, %v624_v28  ;;  %631 = vst [vmem:[#allocation15] sm:$0xff] %v614_v34 }
  0xab   :  { %632 = vst [vmem:[#allocation15 + $0x8] sm:$0xff] %v629_v35 }
  0xac   :  { %645 = dma.vmem_to_hbm [thread:$0]  %s638_s10, 256, %s640_s13, [#allocation4], %s891_s16, %s891_s16, %s892_s17  }
  0xad   :  { %886 = dma.done.wait [#allocation4], 256  }
  0xae   :  { %887 = vsyncadd [#allocation4], 4294967040 }
  0xaf   :  { %650 = vsyncpa [#allocation3], 1 }
  0xb0   :  { %651 = vsyncpa [#allocation4], 1 }
  0xb1   :  { %652 = vsyncpa [#allocation5], 1 }
  0xb2   :  { %653 = vsyncpa [#allocation6], 1 }
  0xb3   :  { %654 = vsyncpa [#allocation10], 1 }
  0xb4   :  { %655 = vsyncpa [#allocation13], 1 }

</bundles_post_ra>
